<compile_context>
chip_gen: v7x
topology: tpu7x:2x2x1
jax: 0.10.0
libtpu: 0.0.40
codegen_flags: <defaults>
</compile_context>

<pallas_src>
import functools

import jax
import jax.numpy as jnp
from jax.experimental import pallas as pl
from jax.experimental.pallas import tpu as pltpu


def _round_up(x, m):
    return ((x + m - 1) // m) * m


def autoencoder_kernel(x_ref, w1_ref, b1_ref, w2_ref, b2_ref, o_ref):
    # x_ref:  (TILE_N, 784) bf16     w1_ref: (784, H) bf16    b1_ref: (1, H)  f32
    # w2_ref: (H, 784)      bf16     b2_ref: (1, 784) f32     o_ref:  (TILE_N, 784) f32
    x = x_ref[...]
    # fc_1 + ReLU  (bf16 MXU operands, f32 accumulation / elementwise)
    h = jnp.dot(x, w1_ref[...], preferred_element_type=jnp.float32)
    h = jnp.maximum(h + b1_ref[...], 0.0)
    # fc_2 + sigmoid
    y = jnp.dot(h.astype(w2_ref.dtype), w2_ref[...], preferred_element_type=jnp.float32)
    y = y + b2_ref[...]
    o_ref[...] = jax.nn.sigmoid(y).astype(o_ref.dtype)


def prepare_params(w1, b1, w2, b2, matmul_dtype=jnp.bfloat16):
    """One-time conversion from PyTorch Linear layout to kernel layout.

    w1: (layer_size, 784) -> (784, layer_size) bf16
    w2: (784, layer_size) -> (layer_size, 784) bf16
    b1, b2: 1-D -> (1, features) f32
    Done once at param-load time so the per-call wrapper pays no transposes.
    """
    w1_t = jnp.asarray(w1, matmul_dtype).T
    w2_t = jnp.asarray(w2, matmul_dtype).T
    b1_2d = jnp.asarray(b1, jnp.float32).reshape(1, -1)
    b2_2d = jnp.asarray(b2, jnp.float32).reshape(1, -1)
    return w1_t, b1_2d, w2_t, b2_2d


@functools.partial(jax.jit, static_argnames=("tile_n",))
def mnist_autoencoder_forward(x_nchw, w1_t, b1_2d, w2_t, b2_2d, *, tile_n=256):
    """Forward pass matching MnistAutoencoder.forward.

    x_nchw: (N, 1, 28, 28)
    w1_t:   (784, H) bf16   b1_2d: (1, H) f32
    w2_t:   (H, 784) bf16   b2_2d: (1, 784) f32
    returns: (N, 1, 28, 28) float32
    """
    n = x_nchw.shape[0]
    in_features, hidden = w1_t.shape          # 784, H
    out_features = w2_t.shape[1]              # 784

    # x.view(-1, 784), cast to the MXU operand dtype.
    x2d = x_nchw.reshape(n, in_features).astype(w1_t.dtype)

    # Batch tile: large enough to fill the MXU (256 rows on v6e/v7x), but no
    # bigger than the (sublane-rounded) batch so tiny batches don't pad to 256.
    tile = min(tile_n, _round_up(n, 8))
    n_pad = _round_up(n, tile)
    if n_pad != n:
        x2d = jnp.pad(x2d, ((0, n_pad - n), (0, 0)))
    grid = (n_pad // tile,)

    dsize = jnp.dtype(w1_t.dtype).itemsize
    cost = pl.CostEstimate(
        flops=2 * n_pad * in_features * hidden + 2 * n_pad * hidden * out_features,
        transcendentals=n_pad * out_features,
        bytes_accessed=(
            n_pad * in_features * dsize            # x in (bf16)
            + n_pad * out_features * 4             # out (f32)
            + (in_features * hidden + hidden * out_features) * dsize  # weights
            + (hidden + out_features) * 4          # biases
        ),
    )

    out2d = pl.pallas_call(
        autoencoder_kernel,
        out_shape=jax.ShapeDtypeStruct((n_pad, out_features), jnp.float32),
        grid=grid,
        in_specs=[
            pl.BlockSpec((tile, in_features), lambda i: (i, 0)),      # x: streamed
            pl.BlockSpec((in_features, hidden), lambda i: (0, 0)),    # w1: resident
            pl.BlockSpec((1, hidden), lambda i: (0, 0)),              # b1: resident
            pl.BlockSpec((hidden, out_features), lambda i: (0, 0)),   # w2: resident
            pl.BlockSpec((1, out_features), lambda i: (0, 0)),        # b2: resident
        ],
        out_specs=pl.BlockSpec((tile, out_features), lambda i: (i, 0)),
        compiler_params=pltpu.CompilerParams(
            dimension_semantics=("parallel",),       # batch axis -> 2 TCs on v7x
        ),
        cost_estimate=cost,
    )(x2d, w1_t, b1_2d, w2_t, b2_2d)

    # .view(-1, 1, 28, 28)
    return out2d[:n].reshape(n, 1, 28, 28)


if __name__ == "__main__":
    key = jax.random.PRNGKey(0)
    k_x, k_w1, k_b1, k_w2, k_b2 = jax.random.split(key, 5)

    batch = 8
    layer_size = 128  # hidden width of the autoencoder bottleneck

    # Deterministic synthetic parameters (PyTorch Linear shapes: weight=(out,in), bias=(out,)).
    x = jax.random.uniform(k_x, (batch, 1, 28, 28), dtype=jnp.float32)
    lim1 = 1.0 / jnp.sqrt(784.0)
    w1 = jax.random.uniform(k_w1, (layer_size, 784), minval=-lim1, maxval=lim1, dtype=jnp.float32)
    b1 = jax.random.uniform(k_b1, (layer_size,), minval=-lim1, maxval=lim1, dtype=jnp.float32)
    lim2 = 1.0 / jnp.sqrt(float(layer_size))
    w2 = jax.random.uniform(k_w2, (784, layer_size), minval=-lim2, maxval=lim2, dtype=jnp.float32)
    b2 = jax.random.uniform(k_b2, (784,), minval=-lim2, maxval=lim2, dtype=jnp.float32)

    # One-time parameter prep (transpose + bf16 cast), hoisted out of the forward.
    params = prepare_params(w1, b1, w2, b2)

    out = mnist_autoencoder_forward(x, *params)
    out = jax.block_until_ready(out)

    # Sanity check against a pure-JAX f32 reference of the same math.
    ref = jax.nn.sigmoid(
        jnp.maximum(x.reshape(batch, 784) @ w1.T + b1, 0.0) @ w2.T + b2
    ).reshape(batch, 1, 28, 28)
    assert out.shape == (batch, 1, 28, 28)
    # bf16 MXU operands with f32 accumulation: allow small elementwise slack.
    assert jnp.allclose(out, ref, atol=2e-2, rtol=2e-2), float(jnp.max(jnp.abs(out - ref)))

    print("KERNEL_OK")
</pallas_src>

<mosaic_0001>
module attributes {stable_mosaic.version = 11 : i64} {
  func.func @autoencoder_kernel(%arg0: i32, %arg1: memref<8x784xbf16, #tpu.memory_space<vmem>>, %arg2: memref<784x128xbf16, #tpu.memory_space<vmem>>, %arg3: memref<1x128xf32, #tpu.memory_space<vmem>>, %arg4: memref<128x784xbf16, #tpu.memory_space<vmem>>, %arg5: memref<1x784xf32, #tpu.memory_space<vmem>>, %arg6: memref<8x784xf32, #tpu.memory_space<vmem>>) attributes {dimension_semantics = [#tpu.dimension_semantics<parallel>], iteration_bounds = array<i64: 1>, scalar_prefetch = 0 : i64, scratch_operands = 0 : i64, tpu.core_type = #tpu.core_type<tc>, window_params = [{transform_indices = @transform_0, window_bounds = array<i64: 8, 784>}, {pipeline_mode = #tpu.pipeline_mode<synchronous>, transform_indices = @transform_1, window_bounds = array<i64: 784, 128>}, {pipeline_mode = #tpu.pipeline_mode<synchronous>, transform_indices = @transform_2, window_bounds = array<i64: 1, 128>}, {pipeline_mode = #tpu.pipeline_mode<synchronous>, transform_indices = @transform_3, window_bounds = array<i64: 128, 784>}, {pipeline_mode = #tpu.pipeline_mode<synchronous>, transform_indices = @transform_4, window_bounds = array<i64: 1, 784>}, {transform_indices = @transform_5, window_bounds = array<i64: 8, 784>}]} {
    %c0 = arith.constant 0 : index
    %c0_0 = arith.constant 0 : index
    %0 = vector.load %arg1[%c0, %c0_0] : memref<8x784xbf16, #tpu.memory_space<vmem>>, vector<8x784xbf16>
    %c0_1 = arith.constant 0 : index
    %c0_2 = arith.constant 0 : index
    %1 = vector.load %arg2[%c0_1, %c0_2] : memref<784x128xbf16, #tpu.memory_space<vmem>>, vector<784x128xbf16>
    %cst = arith.constant dense<0.000000e+00> : vector<8x128xf32>
    %2 = tpu.matmul %0, %1, %cst {dimension_numbers = #tpu.dot_dimension_numbers<[1], [0], [0], [1], [0, 0, 1, 1], [], []>} : vector<8x784xbf16>, vector<784x128xbf16>, vector<8x128xf32> -> vector<8x128xf32>
    %c0_3 = arith.constant 0 : index
    %c0_4 = arith.constant 0 : index
    %3 = vector.load %arg3[%c0_3, %c0_4] : memref<1x128xf32, #tpu.memory_space<vmem>>, vector<1x128xf32>
    %4 = vector.broadcast %3 : vector<1x128xf32> to vector<8x128xf32>
    %5 = arith.addf %2, %4 : vector<8x128xf32>
    %cst_5 = arith.constant 0.000000e+00 : f32
    %6 = vector.broadcast %cst_5 : f32 to vector<8x128xf32>
    %7 = arith.maximumf %5, %6 : vector<8x128xf32>
    %8 = arith.truncf %7 : vector<8x128xf32> to vector<8x128xbf16>
    %c0_6 = arith.constant 0 : index
    %c0_7 = arith.constant 0 : index
    %9 = vector.load %arg4[%c0_6, %c0_7] : memref<128x784xbf16, #tpu.memory_space<vmem>>, vector<128x784xbf16>
    %cst_8 = arith.constant dense<0.000000e+00> : vector<8x784xf32>
    %10 = tpu.matmul %8, %9, %cst_8 {dimension_numbers = #tpu.dot_dimension_numbers<[1], [0], [0], [1], [0, 0, 1, 1], [], []>} : vector<8x128xbf16>, vector<128x784xbf16>, vector<8x784xf32> -> vector<8x784xf32>
    %c0_9 = arith.constant 0 : index
    %c0_10 = arith.constant 0 : index
    %11 = vector.load %arg5[%c0_9, %c0_10] : memref<1x784xf32, #tpu.memory_space<vmem>>, vector<1x784xf32>
    %12 = vector.broadcast %11 : vector<1x784xf32> to vector<8x784xf32>
    %13 = arith.addf %10, %12 : vector<8x784xf32>
    %14 = arith.negf %13 : vector<8x784xf32>
    %15 = math.exp %14 : vector<8x784xf32>
    %cst_11 = arith.constant 1.000000e+00 : f32
    %16 = vector.broadcast %cst_11 : f32 to vector<8x784xf32>
    %17 = arith.addf %16, %15 : vector<8x784xf32>
    %18 = arith.divf %16, %17 : vector<8x784xf32>
    %c0_12 = arith.constant 0 : index
    %c0_13 = arith.constant 0 : index
    %19 = vector.load %arg6[%c0_12, %c0_13] : memref<8x784xf32, #tpu.memory_space<vmem>>, vector<8x784xf32>
    tpu.vector_store %arg6[%c0_12, %c0_13], %18 {strides = array<i32>} : memref<8x784xf32, #tpu.memory_space<vmem>>, vector<8x784xf32>,
    return
  }
  func.func @transform_0(%arg0: i32) -> (i32, i32) {
    %c0_i32 = arith.constant 0 : i32
    %c0_i32_0 = arith.constant 0 : i32
    return %arg0, %c0_i32 : i32, i32
  }
  func.func @transform_1(%arg0: i32) -> (i32, i32) {
    %c0_i32 = arith.constant 0 : i32
    %c0_i32_0 = arith.constant 0 : i32
    %c0_i32_1 = arith.constant 0 : i32
    return %c0_i32, %c0_i32_0 : i32, i32
  }
  func.func @transform_2(%arg0: i32) -> (i32, i32) {
    %c0_i32 = arith.constant 0 : i32
    %c0_i32_0 = arith.constant 0 : i32
    %c0_i32_1 = arith.constant 0 : i32
    return %c0_i32, %c0_i32_0 : i32, i32
  }
  func.func @transform_3(%arg0: i32) -> (i32, i32) {
    %c0_i32 = arith.constant 0 : i32
    %c0_i32_0 = arith.constant 0 : i32
    %c0_i32_1 = arith.constant 0 : i32
    return %c0_i32, %c0_i32_0 : i32, i32
  }
  func.func @transform_4(%arg0: i32) -> (i32, i32) {
    %c0_i32 = arith.constant 0 : i32
    %c0_i32_0 = arith.constant 0 : i32
    %c0_i32_1 = arith.constant 0 : i32
    return %c0_i32, %c0_i32_0 : i32, i32
  }
  func.func @transform_5(%arg0: i32) -> (i32, i32) {
    %c0_i32 = arith.constant 0 : i32
    %c0_i32_0 = arith.constant 0 : i32
    return %arg0, %c0_i32 : i32, i32
  }
}

</mosaic_0001>

<bundles_post_ra>
// kernel: mnist_autoencoder_forward.1
= control target key start
LH: loop header
LB: loop body
LE: loop exit
PB: predicated region body
PF: predicated region fallthrough
CT: control target
= control target key end

     0   :  { %v1610_v41 = vmov 0.0   ;;  %vm1611_vm0 = vmmov 0   ;;  %vm448_vm1 = vcmask 130048   ;;  %s2012_s1 = inlined_call_operand.vmem [shape: bf16[784,128], index: 1, kind: input, shape index: {}]   ;;  %s2013_s0 = inlined_call_operand.vmem [shape: bf16[8,784], index: 0, kind: input, shape index: {}]   ;;  %s2014_s3 = inlined_call_operand.vmem [shape: bf16[128,784], index: 3, kind: input, shape index: {}]   ;;  %s2015_s2 = inlined_call_operand.vmem [shape: f32[1,128], index: 2, kind: input, shape index: {}]   ;;  %s2016_s4 = inlined_call_operand.vmem [shape: f32[1,784], index: 4, kind: input, shape index: {}]   ;;  %s2017_s5 = inlined_call_operand.vmem [shape: f32[8,784], index: 5, kind: output, shape index: {}]  }
   0x1   :  { %v1446_v0 = vld [vmem:[%s2012_s1 + $0x40] sm:$0xff]   ;;  %v1450_v4 = vld [vmem:[%s2012_s1 + $0x48] sm:$0xff]   ;;  %v1454_v8 = vld [vmem:[%s2012_s1 + $0x50] sm:$0xff]  }
   0x2   :  { %v1447_v1 = vld [vmem:[%s2012_s1] sm:$0xff]   ;;  %1340 = vmatprep.subr.bf16.mxu0 %v1446_v0  ;;  %v1451_v5 = vld [vmem:[%s2012_s1 + $0x8] sm:$0xff]   ;;  %v1455_v9 = vld [vmem:[%s2012_s1 + $0x10] sm:$0xff]  }
   0x3   :  { %v1448_v2 = vld [vmem:[%s2012_s1 + $0xc0] sm:$0xff]   ;;  %1341 = vmatpush3.bf16.msra.mxu0 %v1447_v1  ;;  %v1452_v6 = vld [vmem:[%s2012_s1 + $0xc8] sm:$0xff]   ;;  %v1456_v10 = vld [vmem:[%s2012_s1 + $0xd0] sm:$0xff]  }
   0x4   :  { %v1449_v3 = vld [vmem:[%s2012_s1 + $0x80] sm:$0xff]   ;;  %1362 = vmatprep.subr.bf16.mxu1 %v1448_v2  ;;  %1342 = vmatprep.subr.bf16.mxu0 %v1450_v4  ;;  %v1453_v7 = vld [vmem:[%s2012_s1 + $0x88] sm:$0xff]   ;;  %v1457_v11 = vld [vmem:[%s2012_s1 + $0x90] sm:$0xff]  }
   0x5   :  { %1363 = vmatpush3.bf16.msra.mxu1 %v1449_v3  ;;  %v1458_v12 = vld [vmem:[%s2012_s1 + $0x58] sm:$0xff]   ;;  %v1462_v16 = vld [vmem:[%s2012_s1 + $0x60] sm:$0xff]   ;;  %v1466_v20 = vld [vmem:[%s2012_s1 + $0x68] sm:$0xff]  }
   0x6   :  { %1364 = vmatprep.subr.bf16.mxu1 %v1452_v6  ;;  %v1459_v13 = vld [vmem:[%s2012_s1 + $0x18] sm:$0xff]   ;;  %v1463_v17 = vld [vmem:[%s2012_s1 + $0x20] sm:$0xff]   ;;  %v1467_v21 = vld [vmem:[%s2012_s1 + $0x28] sm:$0xff]  }
   0x7   :  { %1343 = vmatpush3.bf16.msra.mxu0 %v1451_v5  ;;  %v1460_v14 = vld [vmem:[%s2012_s1 + $0xd8] sm:$0xff]   ;;  %v1464_v18 = vld [vmem:[%s2012_s1 + $0xe0] sm:$0xff]   ;;  %v1468_v22 = vld [vmem:[%s2012_s1 + $0xe8] sm:$0xff]  }
   0x8   :  { %1344 = vmatprep.subr.bf16.mxu0 %v1454_v8  ;;  %v1461_v15 = vld [vmem:[%s2012_s1 + $0x98] sm:$0xff]   ;;  %v1465_v19 = vld [vmem:[%s2012_s1 + $0xa0] sm:$0xff]   ;;  %v1469_v23 = vld [vmem:[%s2012_s1 + $0xa8] sm:$0xff]  }
   0x9   :  { %1365 = vmatpush3.bf16.msra.mxu1 %v1453_v7  ;;  %v1470_v24 = vld [vmem:[%s2012_s1 + $0x70] sm:$0xff]   ;;  %v1474_v28 = vld [vmem:[%s2012_s1 + $0x78] sm:$0xff]   ;;  %v21_v31 = vld [vmem:[%s2013_s0] sm:$0xff] }
   0xa   :  { %1366 = vmatprep.subr.bf16.mxu1 %v1456_v10  ;;  %v1471_v25 = vld [vmem:[%s2012_s1 + $0x30] sm:$0xff]   ;;  %v1475_v29 = vld [vmem:[%s2012_s1 + $0x38] sm:$0xff]   ;;  %v1220_v32 = vcombine.low %v21_v31, %v21_v31  ;;  %v1221_v33 = vcombine.high %v21_v31, %v21_v31  ;;  %v1481_v35 = vld [vmem:[%s2012_s1 + $0x140] sm:$0xff]  }
   0xb   :  { %1345 = vmatpush3.bf16.msra.mxu0 %v1455_v9  ;;  %v1472_v26 = vld [vmem:[%s2012_s1 + $0xf0] sm:$0xff]   ;;  %v1476_v30 = vld [vmem:[%s2012_s1 + $0xf8] sm:$0xff]   ;;  %v22_v36 = vld [vmem:[%s2013_s0 + $0x8] sm:$0xff] }
   0xc   :  { %1346 = vmatprep.subr.bf16.mxu0 %v1458_v12  ;;  %v1473_v27 = vld [vmem:[%s2012_s1 + $0xb0] sm:$0xff]   ;;  %v1480_v34 = vld [vmem:[%s2012_s1 + $0xb8] sm:$0xff]   ;;  %484 = vmatprep.mubr.bf16.mxu0 %v1221_v33  ;;  %v1222_v37 = vcombine.low %v22_v36, %v22_v36  ;;  %v1223_v38 = vcombine.high %v22_v36, %v22_v36  ;;  %v1484_v39 = vld [vmem:[%s2012_s1 + $0x100] sm:$0xff]  }
   0xd   :  { %1367 = vmatpush3.bf16.msra.mxu1 %v1457_v11  ;;  %v1485_v40 = vld [vmem:[%s2012_s1 + $0x148] sm:$0xff]   ;;  %v1487_v43 = vld [vmem:[%s2012_s1 + $0x150] sm:$0xff]   ;;  %v1489_v45 = vld [vmem:[%s2012_s1 + $0x158] sm:$0xff]  }
   0xe   :  { %1368 = vmatprep.subr.bf16.mxu1 %v1460_v14  ;;  %524 = vmatprep.mubr.bf16.mxu1 %v1223_v38  ;;  %v1486_v42 = vld [vmem:[%s2012_s1 + $0x108] sm:$0xff]   ;;  %v1488_v44 = vld [vmem:[%s2012_s1 + $0x110] sm:$0xff]   ;;  %v1490_v46 = vld [vmem:[%s2012_s1 + $0x118] sm:$0xff]  }
   0xf   :  { %1347 = vmatpush3.bf16.msra.mxu0 %v1459_v13  ;;  %v1491_v47 = vld [vmem:[%s2012_s1 + $0x160] sm:$0xff]   ;;  %v1493_v49 = vld [vmem:[%s2012_s1 + $0x168] sm:$0xff]   ;;  %v23_v51 = vld [vmem:[%s2013_s0 + $0x10] sm:$0xff] }
  0x10   :  { %1348 = vmatprep.subr.bf16.mxu0 %v1462_v16  ;;  %v1492_v48 = vld [vmem:[%s2012_s1 + $0x120] sm:$0xff]   ;;  %v1479_v52 = vld [vmem:[%s2013_s0 + $0x18] ss:$0 sps:$4 sm:$0xff]   ;;  %v1225_v53 = vcombine.high %v23_v51, %v23_v51  ;;  %v1494_v54 = vld [vmem:[%s2012_s1 + $0x128] sm:$0xff]   ;;  %v1224_v59 = vcombine.low %v23_v51, %v23_v51 }
  0x11   :  { %1369 = vmatpush3.bf16.msra.mxu1 %v1461_v15  ;;  %v1499_v50 = vld [vmem:[%s2012_s1 + $0x180] sm:$0xff]   ;;  %v1495_v55 = vld [vmem:[%s2012_s1 + $0x170] sm:$0xff]   ;;  %v1497_v57 = vld [vmem:[%s2012_s1 + $0x178] sm:$0xff]  }
  0x12   :  { %1370 = vmatprep.subr.bf16.mxu1 %v1464_v18  ;;  %v1496_v56 = vld [vmem:[%s2012_s1 + $0x130] sm:$0xff]   ;;  %v1498_v58 = vld [vmem:[%s2012_s1 + $0x138] sm:$0xff]   ;;  %v1504_v61 = vld [vmem:[%s2014_s3 + $0x4] ss:$28 sps:$4 sm:$0xff]  }
  0x13   :  { %1349 = vmatpush3.bf16.msra.mxu0 %v1463_v17  ;;  %v1502_v60 = vld [vmem:[%s2014_s3] ss:$28 sps:$4 sm:$0xff]   ;;  %v1505_v62 = vld [vmem:[%s2014_s3 + $0x8] ss:$28 sps:$4 sm:$0xff]   ;;  %v1508_v0 = vld [vmem:[%s2014_s3 + $0x38] ss:$28 sps:$4 sm:$0xff]  }
  0x14   :  { %1350 = vmatprep.subr.bf16.mxu0 %v1466_v20  ;;  %v1507_v63 = vld [vmem:[%s2014_s3 + $0xc] ss:$28 sps:$4 sm:$0xff]   ;;  %v1510_v1 = vld [vmem:[%s2014_s3 + $0x3c] ss:$28 sps:$4 sm:$0xff]   ;;  %v1513_v3 = vld [vmem:[%s2014_s3 + $0x44] ss:$28 sps:$4 sm:$0xff]  }
  0x15   :  { %1371 = vmatpush3.bf16.msra.mxu1 %v1465_v19  ;;  %v1511_v2 = vld [vmem:[%s2014_s3 + $0x40] ss:$28 sps:$4 sm:$0xff]   ;;  %v1516_v4 = vld [vmem:[%s2014_s3 + $0x74] ss:$28 sps:$4 sm:$0xff]   ;;  %v1522_v8 = vld [vmem:[%s2014_s3 + $0xac] ss:$28 sps:$4 sm:$0xff]  }
  0x16   :  { %1372 = vmatprep.subr.bf16.mxu1 %v1468_v22  ;;  %v1514_v5 = vld [vmem:[%s2014_s3 + $0x70] ss:$28 sps:$4 sm:$0xff]   ;;  %v1519_v6 = vld [vmem:[%s2014_s3 + $0x7c] ss:$28 sps:$4 sm:$0xff]   ;;  %v1520_v10 = vld [vmem:[%s2014_s3 + $0xa8] ss:$28 sps:$4 sm:$0xff]  }
  0x17   :  { %1351 = vmatpush3.bf16.msra.mxu0 %v1467_v21  ;;  %v1517_v7 = vld [vmem:[%s2014_s3 + $0x78] ss:$28 sps:$4 sm:$0xff]   ;;  %v1523_v11 = vld [vmem:[%s2014_s3 + $0xb0] ss:$28 sps:$4 sm:$0xff]   ;;  %v1528_v12 = vld [vmem:[%s2014_s3 + $0xe4] ss:$28 sps:$4 sm:$0xff]  }
  0x18   :  { %1352 = vmatprep.subr.bf16.mxu0 %v1470_v24  ;;  %v1525_v9 = vld [vmem:[%s2014_s3 + $0xb4] ss:$28 sps:$4 sm:$0xff]   ;;  %v1526_v13 = vld [vmem:[%s2014_s3 + $0xe0] ss:$28 sps:$4 sm:$0xff]   ;;  %v1531_v14 = vld [vmem:[%s2014_s3 + $0xec] ss:$28 sps:$4 sm:$0xff]  }
  0x19   :  { %1373 = vmatpush3.bf16.msra.mxu1 %v1469_v23  ;;  %v1529_v15 = vld [vmem:[%s2014_s3 + $0xe8] ss:$28 sps:$4 sm:$0xff]   ;;  %v1534_v16 = vld [vmem:[%s2014_s3 + $0x11c] ss:$28 sps:$4 sm:$0xff]   ;;  %v1540_v20 = vld [vmem:[%s2014_s3 + $0x154] ss:$28 sps:$4 sm:$0xff]  }
  0x1a   :  { %1374 = vmatprep.subr.bf16.mxu1 %v1472_v26  ;;  %v1537_v17 = vld [vmem:[%s2014_s3 + $0x124] ss:$28 sps:$4 sm:$0xff]   ;;  %v1532_v18 = vld [vmem:[%s2014_s3 + $0x118] ss:$28 sps:$4 sm:$0xff]   ;;  %v1538_v22 = vld [vmem:[%s2014_s3 + $0x150] ss:$28 sps:$4 sm:$0xff]  }
  0x1b   :  { %1353 = vmatpush3.bf16.msra.mxu0 %v1471_v25  ;;  %v1535_v19 = vld [vmem:[%s2014_s3 + $0x120] ss:$28 sps:$4 sm:$0xff]   ;;  %v1541_v23 = vld [vmem:[%s2014_s3 + $0x158] ss:$28 sps:$4 sm:$0xff]   ;;  %v1546_v24 = vld [vmem:[%s2014_s3 + $0x18c] ss:$28 sps:$4 sm:$0xff]  }
  0x1c   :  { %1354 = vmatprep.subr.bf16.mxu0 %v1474_v28  ;;  %v1543_v21 = vld [vmem:[%s2014_s3 + $0x15c] ss:$28 sps:$4 sm:$0xff]   ;;  %v1549_v25 = vld [vmem:[%s2014_s3 + $0x194] ss:$28 sps:$4 sm:$0xff]   ;;  %v1544_v26 = vld [vmem:[%s2014_s3 + $0x188] ss:$28 sps:$4 sm:$0xff]  }
  0x1d   :  { %1375 = vmatpush3.bf16.msra.mxu1 %v1473_v27  ;;  %v1547_v27 = vld [vmem:[%s2014_s3 + $0x190] ss:$28 sps:$4 sm:$0xff]   ;;  %v1219_v31 = vld [vmem:[%s2015_s2] ss:$0 sm:$0xff] }
  0x1e   :  { %1376 = vmatprep.subr.bf16.mxu1 %v1476_v30  ;;  %v1552_v28 = vld [vmem:[%s2014_s3 + $0x14] ss:$28 sps:$4 sm:$0xff]  }
  0x1f   :  { %1355 = vmatpush3.bf16.msra.mxu0 %v1475_v29  ;;  %v1612_v29 = vmov 0  }
  0x20   :  { %1384 = vmatprep.subr.bf16.mxu0 %v1481_v35 }
  0x21   :  { %1377 = vmatpush3.bf16.msra.mxu1 %v1480_v34 }
  0x22   :  { %485 = vmatmul.mubr.bf16.vlgmr.msra.gmra.mrb[0].mxu0 %v1220_v32  ;;  %1417 = vmatprep.subr.bf16.mxu1 %v1610_v41 }
  0x23   :  { %1385 = vmatpush3.bf16.msra.mxu0 %v1484_v39  ;;  %564 = vmatprep.mubr.bf16.mxu0 %v1225_v53 }
  0x24   :  { %525 = vmatmul.mubr.bf16.vlgmr.msra.gmra.mrb[0].mxu1 %v1222_v37  ;;  %1386 = vmatprep.subr.bf16.mxu0 %v1485_v40 }
  0x25   :  { %1419 = vmatprep.mubr.msk.bf16.mxu1 %vm1611_vm0, %v1610_v41  ;;  %1418 = vmatpush3.bf16.msra.mxu1 %v1499_v50 }
  0x26   :  { %1003 = vmatprep.subr.bf16.mxu1 %v1504_v61  ;;  %v1557_v61 = vld [vmem:[%s2014_s3 + $0x50] ss:$28 sps:$4 sm:$0xff]  }
  0x27   :  { %1387 = vmatpush3.bf16.msra.mxu0 %v1486_v42 }
  0x28   :  { %1388 = vmatprep.subr.bf16.mxu0 %v1487_v43 }
  0x2b   :  { %1389 = vmatpush3.bf16.msra.mxu0 %v1488_v44 }
  0x2c   :  { %1390 = vmatprep.subr.bf16.mxu0 %v1489_v45  ;;  %1420 = vmatmul.mubr.msk.bf16.vlgmr.msra.gmra.mrb[4].mxu1 %vm448_vm1, %v1479_v52 }
  0x2d   :  { %1004 = vmatpush1.bf16.msra.mxu1 %v1502_v60  ;;  %1035 = vmatprep.mubr.bf16.mxu1 %v1612_v29  ;;  %v1554_v60 = vld [vmem:[%s2014_s3 + $0x48] ss:$28 sps:$4 sm:$0xff]  }
  0x2e   :  { %1005 = vmatprep.subr.bf16.mxu1 %v1510_v1  ;;  %v1564_v1 = vld [vmem:[%s2014_s3 + $0xbc] ss:$28 sps:$4 sm:$0xff]  }
  0x2f   :  { %1391 = vmatpush3.bf16.msra.mxu0 %v1490_v46 }
  0x30   :  { %1392 = vmatprep.subr.bf16.mxu0 %v1491_v47 }
  0x31   :  { %1006 = vmatpush1.bf16.msra.mxu1 %v1508_v0  ;;  %v1561_v0 = vld [vmem:[%s2014_s3 + $0x88] ss:$28 sps:$4 sm:$0xff]  }
  0x32   :  { %1007 = vmatprep.subr.bf16.mxu1 %v1516_v4  ;;  %v1568_v4 = vld [vmem:[%s2014_s3 + $0xf4] ss:$28 sps:$4 sm:$0xff]  }
  0x33   :  { %1393 = vmatpush3.bf16.msra.mxu0 %v1492_v48 }
  0x34   :  { %1394 = vmatprep.subr.bf16.mxu0 %v1493_v49 }
  0x35   :  { %1008 = vmatpush1.bf16.msra.mxu1 %v1514_v5  ;;  %v1566_v5 = vld [vmem:[%s2014_s3 + $0xf0] ss:$28 sps:$4 sm:$0xff]  }
  0x36   :  { %1009 = vmatprep.subr.bf16.mxu1 %v1522_v8  ;;  %v1570_v8 = vld [vmem:[%s2014_s3 + $0x128] ss:$28 sps:$4 sm:$0xff]  }
  0x37   :  { %1395 = vmatpush3.bf16.msra.mxu0 %v1494_v54 }
  0x38   :  { %1396 = vmatprep.subr.bf16.mxu0 %v1495_v55 }
  0x39   :  { %1010 = vmatpush1.bf16.msra.mxu1 %v1520_v10  ;;  %v1576_v10 = vld [vmem:[%s2014_s3 + $0x164] ss:$28 sps:$4 sm:$0xff]  }
  0x3a   :  { %1011 = vmatprep.subr.bf16.mxu1 %v1528_v12  ;;  %v1577_v12 = vld [vmem:[%s2014_s3 + $0x168] ss:$28 sps:$4 sm:$0xff]  }
  0x3b   :  { %1397 = vmatpush3.bf16.msra.mxu0 %v1496_v56  ;;  %v1550_v56 = vld [vmem:[%s2014_s3 + $0x10] ss:$28 sps:$4 sm:$0xff]  }
  0x3c   :  { %1398 = vmatprep.subr.bf16.mxu0 %v1497_v57  ;;  %v1553_v57 = vld [vmem:[%s2014_s3 + $0x18] ss:$28 sps:$4 sm:$0xff]  }
  0x3d   :  { %1012 = vmatpush1.bf16.msra.mxu1 %v1526_v13  ;;  %v1580_v13 = vld [vmem:[%s2014_s3 + $0x19c] ss:$28 sps:$4 sm:$0xff]  }
  0x3e   :  { %1013 = vmatprep.subr.bf16.mxu1 %v1534_v16  ;;  %v680_v16 = vlaneseq }
  0x3f   :  { %1399 = vmatpush3.bf16.msra.mxu0 %v1498_v58 }
  0x40   :  { %1044 = vmatprep.subr.bf16.mxu0 %v1507_v63  ;;  %v1558_v63 = vld [vmem:[%s2014_s3 + $0x80] ss:$28 sps:$4 sm:$0xff]  }
  0x41   :  { %1014 = vmatpush1.bf16.msra.mxu1 %v1532_v18 }
  0x42   :  { %565 = vmatmul.mubr.bf16.vlgmr.msra.gmra.mrb[4].mxu0 %v1224_v59  ;;  %1015 = vmatprep.subr.bf16.mxu1 %v1540_v20  ;;  %v1556_v59 = vld [vmem:[%s2014_s3 + $0x4c] ss:$28 sps:$4 sm:$0xff]   ;;  %v678_v20 = vld [vmem:[%s2016_s4] sm:$0x7f] }
  0x43   :  { %1045 = vmatpush1.bf16.msra.mxu0 %v1505_v62  ;;  %1076 = vmatprep.mubr.bf16.mxu0 %v1612_v29  ;;  %v1560_v62 = vld [vmem:[%s2014_s3 + $0x84] ss:$28 sps:$4 sm:$0xff]  }
  0x44   :  { %1046 = vmatprep.subr.bf16.mxu0 %v1513_v3  ;;  %v1565_v3 = vld [vmem:[%s2014_s3 + $0xc0] ss:$28 sps:$4 sm:$0xff]  }
  0x45   :  { %1016 = vmatpush1.bf16.msra.mxu1 %v1538_v22 }
  0x46   :  { %1017 = vmatprep.subr.bf16.mxu1 %v1546_v24 }
  0x47   :  { %1047 = vmatpush1.bf16.msra.mxu0 %v1511_v2  ;;  %v1562_v2 = vld [vmem:[%s2014_s3 + $0xb8] ss:$28 sps:$4 sm:$0xff]  }
  0x48   :  { %1048 = vmatprep.subr.bf16.mxu0 %v1519_v6  ;;  %v1569_v6 = vld [vmem:[%s2014_s3 + $0xf8] ss:$28 sps:$4 sm:$0xff]  }
  0x49   :  { %1018 = vmatpush1.bf16.msra.mxu1 %v1544_v26 }
  0x4a   :  { %1085 = vmatprep.subr.bf16.mxu1 %v1552_v28 }
  0x4b   :  { %1049 = vmatpush1.bf16.msra.mxu0 %v1517_v7  ;;  %v1572_v7 = vld [vmem:[%s2014_s3 + $0x12c] ss:$28 sps:$4 sm:$0xff]  }
  0x4c   :  { %1050 = vmatprep.subr.bf16.mxu0 %v1525_v9  ;;  %v1573_v9 = vld [vmem:[%s2014_s3 + $0x130] ss:$28 sps:$4 sm:$0xff]  }
  0x4f   :  { %1051 = vmatpush1.bf16.msra.mxu0 %v1523_v11  ;;  %v1574_v11 = vld [vmem:[%s2014_s3 + $0x160] ss:$28 sps:$4 sm:$0xff]  }
  0x50   :  { %1052 = vmatprep.subr.bf16.mxu0 %v1531_v14  ;;  %v1578_v14 = vld [vmem:[%s2014_s3 + $0x198] ss:$28 sps:$4 sm:$0xff]  }
  0x53   :  { %1053 = vmatpush1.bf16.msra.mxu0 %v1529_v15  ;;  %v1581_v15 = vld [vmem:[%s2014_s3 + $0x1a0] ss:$28 sps:$4 sm:$0xff]  }
  0x54   :  { %1054 = vmatprep.subr.bf16.mxu0 %v1537_v17  ;;  %v681_v17 = vshrl.u32 %v680_v16, 7 }
  0x56   :  { %v682_v18 = vsub.s32 0, %v681_v17  ;;  %v694_v22 = vsub.s32 3, %v681_v17 }
  0x57   :  { %1055 = vmatpush1.bf16.msra.mxu0 %v1535_v19  ;;  %v690_v19 = vsub.s32 2, %v681_v17 }
  0x58   :  { %1056 = vmatprep.subr.bf16.mxu0 %v1543_v21  ;;  %v686_v21 = vsub.s32 1, %v681_v17  ;;  %v695_v26 = vrot.slane %v678_v20, %v694_v22 }
  0x59   :  { %v691_v24 = vrot.slane %v678_v20, %v690_v19 }
  0x5b   :  { %1057 = vmatpush1.bf16.msra.mxu0 %v1541_v23  ;;  %v683_v23 = vrot.slane %v678_v20, %v682_v18 }
  0x5c   :  { %1058 = vmatprep.subr.bf16.mxu0 %v1549_v25  ;;  %v687_v25 = vrot.slane %v678_v20, %v686_v21 }
  0x5f   :  { %1059 = vmatpush1.bf16.msra.mxu0 %v1547_v27 }
  0x60   :  { %1423 = vmatprep.subr.bf16.mxu0 %v1610_v41 }
  0xf5   :  { %v1356_v30 = vpop.f32.mrb[0].mxu0 }
  0xf6   :  { %v1357_v32 = vpop.f32.mrb[1].mxu0 }
  0xf7   :  { %v1358_v33 = vadd.f32 %v1357_v32, %v1356_v30  ;;  %v1359_v34 = vpop.f32.mrb[2].mxu0  ;;  %v1378_v35 = vpop.f32.mrb[0].mxu1 }
  0xf8   :  { %v1360_v36 = vpop.f32.mrb[3].mxu0  ;;  %v1379_v38 = vpop.f32.mrb[1].mxu1 }
  0xf9   :  { %v487_v37 = vadd.f32 %v1358_v33, %v1219_v31  ;;  %v1380_v39 = vadd.f32 %v1379_v38, %v1378_v35  ;;  %v1381_v40 = vpop.f32.mrb[2].mxu1 }
  0xfa   :  { %v1382_v42 = vpop.f32.mrb[3].mxu1 }
  0xfb   :  { %v527_v43 = vadd.f32 %v1380_v39, %v487_v37 }
  0xff   :  { %v606_v44 = vpop.f32.mrb[4].mxu1 }
 0x100   :  { %v1421_v45 = vpop.f32.mrb[5].mxu1 }
 0x101   :  { %v609_v46 = vpop.f32.mrb[6].mxu1 }
 0x102   :  { %v1422_v47 = vpop.f32.mrb[7].mxu1 }
 0x115   :  { %v1400_v48 = vpop.f32.mrb[4].mxu0 }
 0x116   :  { %v1401_v49 = vpop.f32.mrb[5].mxu0 }
 0x117   :  { %v1402_v50 = vadd.f32 %v1401_v49, %v1400_v48  ;;  %v1403_v51 = vpop.f32.mrb[6].mxu0 }
 0x118   :  { %v1404_v52 = vpop.f32.mrb[7].mxu0  ;;  %v698_v51 = vsub.s32 4, %v681_v17 }
 0x119   :  { %v567_v53 = vadd.f32 %v1402_v50, %v527_v43  ;;  %v706_v52 = vsub.s32 6, %v681_v17 }
 0x11b   :  { %v607_v54 = vadd.f32 %v606_v44, %v567_v53  ;;  %v702_v53 = vsub.s32 5, %v681_v17 }
 0x11d   :  { %v612_v55 = vmax.f32 %v607_v54, 0.0 }
 0x11f   :  { %v613_v58 = vpack.c.bf16 %v612_v55, %v612_v55 }
 0x121   :  { %1036 = vmatmul.mubr.bf16.vlgmr.msra.gmra.mrb[8].mxu1 %v613_v58  ;;  %1077 = vmatmul.mubr.bf16.vlgmr.msra.gmra.mrb[8].mxu0 %v613_v58 }
 0x122   :  { %1086 = vmatpush1.bf16.msra.mxu1 %v1550_v56  ;;  %1424 = vmatpush3.bf16.msra.mxu0 %v1553_v57  ;;  %v699_v56 = vrot.slane %v678_v20, %v698_v51  ;;  %v707_v57 = vrot.slane %v678_v20, %v706_v52 }
 0x123   :  { %1087 = vmatprep.subr.bf16.mxu1 %v1556_v59  ;;  %1425 = vmatprep.subr.bf16.mxu0 %v1610_v41  ;;  %v703_v59 = vrot.slane %v678_v20, %v702_v53 }
 0x124   :  { %1117 = vmatprep.mubr.bf16.mxu1 %v1612_v29  ;;  %1439 = vmatprep.mubr.msk.bf16.mxu0 %vm1611_vm0, %v1610_v41 }
 0x126   :  { %1088 = vmatpush1.bf16.msra.mxu1 %v1554_v60  ;;  %1426 = vmatpush3.bf16.msra.mxu0 %v1557_v61 }
 0x127   :  { %1089 = vmatprep.subr.bf16.mxu1 %v1560_v62  ;;  %1427 = vmatprep.subr.bf16.mxu0 %v1610_v41 }
 0x12a   :  { %1090 = vmatpush1.bf16.msra.mxu1 %v1558_v63  ;;  %1428 = vmatpush3.bf16.msra.mxu0 %v1561_v0 }
 0x12b   :  { %1091 = vmatprep.subr.bf16.mxu1 %v1564_v1  ;;  %1429 = vmatprep.subr.bf16.mxu0 %v1610_v41 }
 0x12e   :  { %1092 = vmatpush1.bf16.msra.mxu1 %v1562_v2  ;;  %1430 = vmatpush3.bf16.msra.mxu0 %v1565_v3 }
 0x12f   :  { %1093 = vmatprep.subr.bf16.mxu1 %v1568_v4  ;;  %1431 = vmatprep.subr.bf16.mxu0 %v1610_v41 }
 0x132   :  { %1094 = vmatpush1.bf16.msra.mxu1 %v1566_v5  ;;  %1432 = vmatpush3.bf16.msra.mxu0 %v1569_v6 }
 0x133   :  { %1095 = vmatprep.subr.bf16.mxu1 %v1572_v7  ;;  %1433 = vmatprep.subr.bf16.mxu0 %v1610_v41 }
 0x136   :  { %1096 = vmatpush1.bf16.msra.mxu1 %v1570_v8  ;;  %1434 = vmatpush3.bf16.msra.mxu0 %v1573_v9 }
 0x137   :  { %1097 = vmatprep.subr.bf16.mxu1 %v1576_v10  ;;  %1435 = vmatprep.subr.bf16.mxu0 %v1610_v41 }
 0x13a   :  { %1098 = vmatpush1.bf16.msra.mxu1 %v1574_v11  ;;  %1436 = vmatpush3.bf16.msra.mxu0 %v1577_v12 }
 0x13b   :  { %1099 = vmatprep.subr.bf16.mxu1 %v1580_v13  ;;  %1437 = vmatprep.subr.bf16.mxu0 %v1610_v41 }
 0x13e   :  { %1100 = vmatpush1.bf16.msra.mxu1 %v1578_v14  ;;  %1438 = vmatpush3.bf16.msra.mxu0 %v1581_v15 }
 0x141   :  { %1118 = vmatmul.mubr.bf16.vlgmr.msra.gmra.mrb[12].mxu1 %v613_v58  ;;  %1440 = vmatmul.mubr.bf16.vlgmr.msra.gmra.mrb[12].mxu0 %v613_v58 }
 0x1f4   :  { %v1037_v27 = vpop.f32.mrb[8].mxu1  ;;  %v1078_v41 = vpop.f32.mrb[8].mxu0 }
 0x1f5   :  { %v1038_v28 = vadd.f32 %v1037_v27, %v683_v23  ;;  %v1079_v29 = vadd.f32 %v1078_v41, %v691_v24  ;;  %v1039_v30 = vpop.f32.mrb[9].mxu1  ;;  %v1080_v31 = vpop.f32.mrb[9].mxu0 }
 0x1f6   :  { %v1040_v32 = vadd.f32 %v1039_v30, %v687_v25  ;;  %v1081_v33 = vadd.f32 %v1080_v31, %v695_v26  ;;  %v1041_v34 = vpop.f32.mrb[10].mxu1  ;;  %v1082_v35 = vpop.f32.mrb[10].mxu0 }
 0x1f7   :  { %v1333_v36 = vmul.f32 -1.442695, %v1038_v28  ;;  %v1335_v37 = vmul.f32 -1.442695, %v1079_v29  ;;  %v1042_v38 = vpop.f32.mrb[11].mxu1  ;;  %v1083_v39 = vpop.f32.mrb[11].mxu0 }
 0x1f8   :  { %v1334_v40 = vmul.f32 -1.442695, %v1040_v32  ;;  %v1336_v42 = vmul.f32 -1.442695, %v1081_v33 }
 0x1f9   :  { %1582 = vpow2.f32 %v1333_v36 }
 0x1fa   :  { %1584 = vpow2.f32 %v1335_v37 }
 0x1fb   :  { %1586 = vpow2.f32 %v1334_v40 }
 0x1fc   :  { %1588 = vpow2.f32 %v1336_v42 }
 0x203   :  { %v1583_v43 = vpop.eup %1582 }
 0x204   :  { %v1585_v44 = vpop.eup %1584  ;;  %v1187_v45 = vadd.f32 1.0, %v1583_v43 }
 0x205   :  { %v1587_v46 = vpop.eup %1586  ;;  %v1189_v47 = vadd.f32 1.0, %v1585_v44 }
 0x206   :  { %v1589_v48 = vpop.eup %1588  ;;  %1590 = vrcp.f32 %v1187_v45  ;;  %v1188_v49 = vadd.f32 1.0, %v1587_v46 }
 0x207   :  { %1592 = vrcp.f32 %v1189_v47  ;;  %v1190_v50 = vadd.f32 1.0, %v1589_v48 }
 0x208   :  { %1594 = vrcp.f32 %v1188_v49 }
 0x209   :  { %1596 = vrcp.f32 %v1190_v50 }
 0x210   :  { %v1591_v54 = vpop.eup %1590 }
 0x211   :  { %v1593_v55 = vpop.eup %1592  ;;  %1208 = vst [vmem:[%s2017_s5] sm:$0xff] %v1591_v54 }
 0x212   :  { %v1595_v58 = vpop.eup %1594  ;;  %1210 = vst [vmem:[%s2017_s5 + $0x10] sm:$0xff] %v1593_v55 }
 0x213   :  { %v1597_v60 = vpop.eup %1596  ;;  %1209 = vst [vmem:[%s2017_s5 + $0x8] sm:$0xff] %v1595_v58 }
 0x214   :  { %1211 = vst [vmem:[%s2017_s5 + $0x18] sm:$0xff] %v1597_v60  ;;  %v1119_v61 = vpop.f32.mrb[12].mxu1  ;;  %v1160_v62 = vpop.f32.mrb[12].mxu0 }
 0x215   :  { %v1120_v63 = vadd.f32 %v1119_v61, %v699_v56  ;;  %v1161_v0 = vadd.f32 %v1160_v62, %v707_v57  ;;  %v1121_v1 = vpop.f32.mrb[13].mxu1  ;;  %v1441_v2 = vpop.f32.mrb[13].mxu0 }
 0x216   :  { %v1122_v3 = vadd.f32 %v1121_v1, %v703_v59  ;;  %v1123_v4 = vpop.f32.mrb[14].mxu1  ;;  %v1163_v5 = vpop.f32.mrb[14].mxu0 }
 0x217   :  { %v1337_v6 = vmul.f32 -1.442695, %v1120_v63  ;;  %v1339_v7 = vmul.f32 -1.442695, %v1161_v0  ;;  %v1124_v8 = vpop.f32.mrb[15].mxu1  ;;  %v1442_v9 = vpop.f32.mrb[15].mxu0 }
 0x218   :  { %v1338_v10 = vmul.f32 -1.442695, %v1122_v3 }
 0x219   :  { %1598 = vpow2.f32 %v1337_v6 }
 0x21a   :  { %1600 = vpow2.f32 %v1339_v7 }
 0x21b   :  { %1602 = vpow2.f32 %v1338_v10 }
 0x223   :  { %v1599_v11 = vpop.eup %1598 }
 0x224   :  { %v1601_v12 = vpop.eup %1600  ;;  %v1191_v13 = vadd.f32 1.0, %v1599_v11 }
 0x225   :  { %v1603_v14 = vpop.eup %1602  ;;  %v1193_v15 = vadd.f32 1.0, %v1601_v12 }
 0x226   :  { %1604 = vrcp.f32 %v1191_v13  ;;  %v1192_v16 = vadd.f32 1.0, %v1603_v14 }
 0x227   :  { %1606 = vrcp.f32 %v1193_v15 }
 0x228   :  { %1608 = vrcp.f32 %v1192_v16 }
 0x230   :  { %v1605_v17 = vpop.eup %1604 }
 0x231   :  { %v1607_v18 = vpop.eup %1606  ;;  %1212 = vst [vmem:[%s2017_s5 + $0x20] sm:$0xff] %v1605_v17 }
 0x232   :  { %v1609_v19 = vpop.eup %1608  ;;  %1214 = vst.msk [vmem:[%s2017_s5 + $0x30] sm:$0xff] %vm448_vm1, %v1607_v18 }
 0x233   :  { %1213 = vst [vmem:[%s2017_s5 + $0x28] sm:$0xff] %v1609_v19 }

</bundles_post_ra>
